<compile_context>
chip_gen: v6e
topology: v6e:2x2x1
jax: 0.10.0
libtpu: 0.0.40
codegen_flags: <defaults>
</compile_context>

<pallas_src>
import jax
import jax.numpy as jnp
from jax.experimental import pallas as pl
from jax.experimental.pallas import tpu as pltpu


_TARGET_BLOCK_BYTES = 8 << 20    # ~8 MiB per block
_VMEM_LIMIT_BYTES = 40 << 20     # 8 MiB x 2 bufs x (in+out) = 32 MiB, + headroom
_MULTI_TC_MIN_BYTES = 1 << 20    # only force a 2-way split for >= 1 MiB inputs
_SMALL_INPUT_BYTES = 256 << 10   # below this, plain jnp.round is faster
_WIDE_LANES = 1024
_MIN_SUBLANE = {1: 32, 2: 16, 4: 8}   # dtype-min sublane pack per itemsize


def _round_kernel(x_ref, o_ref):
    # Elementwise round-half-to-even on the whole VMEM tile (VPU path).
    o_ref[...] = jnp.round(x_ref[...])


def _round_up(v: int, m: int) -> int:
    return ((v + m - 1) // m) * m


def _choose_lanes(total: int, sublane: int) -> int:
    # Widest dividing lane count first: keeps vst unmasked AND avoids padding.
    for lanes in (1024, 512, 256, 128):
        if total % lanes == 0:
            return lanes
    # Nothing divides: pad path (pad amount < lanes elements either way).
    return _WIDE_LANES if total >= _WIDE_LANES * sublane else 128


def ste_forward(x: jax.Array,
                *,
                min_pallas_bytes: int = _SMALL_INPUT_BYTES,
                donate_input: bool = False) -> jax.Array:
    """Straight-through estimator forward: round(x), same shape/dtype as x."""
    orig_shape = x.shape
    total = int(x.size)
    itemsize = x.dtype.itemsize
    total_bytes = total * itemsize

    # --- small-input fast path -------------------------------------------
    if total == 0 or total_bytes < min_pallas_bytes:
        return jnp.round(x)

    sublane = _MIN_SUBLANE.get(itemsize, 8)

    # --- layout: lane-dense 2D slab ----------------------------------------
    lanes = _choose_lanes(total, sublane)
    rows = pl.cdiv(total, lanes)
    padded_total = rows * lanes
    need_pad = padded_total != total

    # --- block sizing: ~8 MiB blocks, sublane-aligned row counts ------------
    block_rows = max(
        sublane,
        (_TARGET_BLOCK_BYTES // (lanes * itemsize)) // sublane * sublane,
    )
    block_rows = min(block_rows, rows)   # block == full rows is always legal
    grid = pl.cdiv(rows, block_rows)     # last partial block is masked

    # v7x megacore: for large inputs prefer a balanced even number of grid
    # steps so both TensorCores stream; skip entirely for small inputs
    # (single-TC chips would only pay extra per-step overhead).
    if total_bytes >= _MULTI_TC_MIN_BYTES and rows >= 2 * sublane:
        if grid == 1:
            block_rows = _round_up(pl.cdiv(rows, 2), sublane)
        elif grid % 2 == 1:
            block_rows = max(sublane,
                             _round_up(pl.cdiv(rows, grid + 1), sublane))
        grid = pl.cdiv(rows, block_rows)

    # --- wrapper-side reshape (pad only when strictly necessary) ------------
    x_flat = jnp.ravel(x)
    if need_pad:
        x_flat = jnp.pad(x_flat, (0, padded_total - total))
    x2d = x_flat.reshape(rows, lanes)

    out2d = pl.pallas_call(
        _round_kernel,
        out_shape=jax.ShapeDtypeStruct((rows, lanes), x2d.dtype),
        grid_spec=pltpu.PrefetchScalarGridSpec(
            num_scalar_prefetch=0,
            grid=(grid,),
            in_specs=[pl.BlockSpec((block_rows, lanes), lambda i: (i, 0))],
            out_specs=pl.BlockSpec((block_rows, lanes), lambda i: (i, 0)),
        ),
        compiler_params=pltpu.CompilerParams(
            dimension_semantics=("parallel",),
            vmem_limit_bytes=_VMEM_LIMIT_BYTES,
        ),
        input_output_aliases=({0: 0} if donate_input else {}),
    )(x2d)

    if need_pad:
        return out2d.reshape(-1)[:total].reshape(orig_shape)
    return out2d.reshape(orig_shape)


# --- straight-through estimator: round forward, identity backward -----------
@jax.custom_vjp
def straight_through_estimator(x: jax.Array) -> jax.Array:
    return ste_forward(x)


def _ste_fwd_rule(x):
    return ste_forward(x), None


def _ste_bwd_rule(_, grad_output):
    return (grad_output,)


straight_through_estimator.defvjp(_ste_fwd_rule, _ste_bwd_rule)


if __name__ == "__main__":
    key = jax.random.PRNGKey(0)
    # NCHW input, small shape consistent with an image-model context.
    x = jax.random.normal(key, (2, 4, 16, 16), dtype=jnp.float32) * 3.0

    # Force the Pallas path for the tiny demo input (default fast path would
    # dispatch it to plain jnp.round).
    y = ste_forward(x, min_pallas_bytes=0)
    jax.block_until_ready(y)

    # Correctness check against pure-JAX reference.
    y_ref = jnp.round(x)
    assert y.shape == x.shape and y.dtype == x.dtype
    assert bool(jnp.all(y == y_ref))

    # Default-path (fast path for small inputs) must also match.
    y_fast = straight_through_estimator(x)
    assert bool(jnp.all(y_fast == y_ref))

    # Straight-through gradient: backward is identity.
    g = jax.grad(lambda v: jnp.sum(straight_through_estimator(v)))(x)
    assert bool(jnp.all(g == jnp.ones_like(x)))

    print("KERNEL_OK")
</pallas_src>

<mosaic_0001>
module attributes {stable_mosaic.version = 11 : i64} {
  func.func @_round_kernel(%arg0: i32, %arg1: memref<2x1024xf32, #tpu.memory_space<vmem>>, %arg2: memref<2x1024xf32, #tpu.memory_space<vmem>>) attributes {dimension_semantics = [#tpu.dimension_semantics<parallel>], iteration_bounds = array<i64: 1>, scalar_prefetch = 0 : i64, scratch_operands = 0 : i64, tpu.core_type = #tpu.core_type<tc>, window_params = [{transform_indices = @transform_0, window_bounds = array<i64: 2, 1024>}, {transform_indices = @transform_1, window_bounds = array<i64: 2, 1024>}]} {
    %c0 = arith.constant 0 : index
    %c0_0 = arith.constant 0 : index
    %0 = vector.load %arg1[%c0, %c0_0] : memref<2x1024xf32, #tpu.memory_space<vmem>>, vector<2x1024xf32>
    %1 = math.roundeven %0 : vector<2x1024xf32>
    %c0_1 = arith.constant 0 : index
    %c0_2 = arith.constant 0 : index
    %2 = vector.load %arg2[%c0_1, %c0_2] : memref<2x1024xf32, #tpu.memory_space<vmem>>, vector<2x1024xf32>
    tpu.vector_store %arg2[%c0_1, %c0_2], %1 {strides = array<i32>} : memref<2x1024xf32, #tpu.memory_space<vmem>>, vector<2x1024xf32>,
    return
  }
  func.func @transform_0(%arg0: i32) -> (i32, i32) {
    %c0_i32 = arith.constant 0 : i32
    %c0_i32_0 = arith.constant 0 : i32
    return %arg0, %c0_i32 : i32, i32
  }
  func.func @transform_1(%arg0: i32) -> (i32, i32) {
    %c0_i32 = arith.constant 0 : i32
    %c0_i32_0 = arith.constant 0 : i32
    return %arg0, %c0_i32 : i32, i32
  }
}

</mosaic_0001>

<bundles_post_ra>
// kernel: tpu_custom_call.1
= control target key start
LH: loop header
LB: loop body
LE: loop exit
PB: predicated region body
PF: predicated region fallthrough
CT: control target
= control target key end

     0   :  { %6 = vsyncpa [#allocation3], 0  ;;  %s122_s0 = inlined_call_operand.hbm [shape: f32[2,1024], index: 0, kind: input, shape index: {}]   ;;  %s123_s1 = inlined_call_operand.hbm [shape: f32[2,1024], index: 1, kind: output, shape index: {}]  }
   0x1   :  { %7 = vsyncpa [#allocation4], 0  ;;  %s104_s6 = smov [#allocation2]  }
   0x2   :  { %s14_s7 = sshll.u32 %s104_s6, 4  ;;  %s15_s7 = int_to_ptr.vmem [resolvable:$true] %s14_s7 }
   0x3   :  { %s68_s8 = scalar_lea.vmem %s15_s7, 256  ;;  %p73_p1 = scmp.lt.s32.totalorder %s15_s7, %s15_s7 }
   0x4   :  { %p69_p0 = scmp.ne.s32.totalorder %s15_s7, %s68_s8  ;;  %p74_p2 = scmp.lt.s32.totalorder %s68_s8, %s68_s8 }
   0x6   :  { %p75_p3 = por %p74_p2, %p73_p1 }
   0x8   :  { %p76_p4 = pnand %p75_p3, %p69_p0 }
   0xa   :  { %79 = shalt.err (!%p76_p4)
}
   0xb   :  { %17 = dma.hbm_to_vmem [thread:$0]  %s122_s0, 256, %s15_s7, [#allocation3]  }
   0xc   :  { %100 = dma.done.wait [#allocation3], 256  }
   0xd   :  { %101 = vsyncadd [#allocation3], 4294967040  ;;  %v21_v0 = vld [vmem:[#allocation2] sm:$0xff]  ;;  %v22_v1 = vld [vmem:[#allocation2 + $0x8] sm:$0xff]  ;;  %s105_s11 = smov [#allocation5]  }
   0xe   :  { %v44_v2 = vcvt.f32.s32 %v21_v0  ;;  %v42_v3 = vand.u32 2147483647, %v21_v0  ;;  %v52_v4 = vcvt.f32.s32 %v22_v1  ;;  %v47_v6 = vand.u32 2147483648, %v21_v0  ;;  %s33_s12 = sshll.u32 %s105_s11, 4  ;;  %s34_s12 = int_to_ptr.vmem [resolvable:$true] %s33_s12 }
   0xf   :  { %v50_v7 = vand.u32 2147483647, %v22_v1  ;;  %v55_v9 = vand.u32 2147483648, %v22_v1  ;;  %s80_s0 = scalar_lea.vmem %s34_s12, 256  ;;  %p85_p6 = scmp.lt.s32.totalorder %s34_s12, %s34_s12 }
  0x10   :  { %v45_v5 = vcvt.s32.f32 %v44_v2  ;;  %v53_v8 = vcvt.s32.f32 %v52_v4  ;;  %vm43_vm0 = vcmp.lt.f32.partialorder %v42_v3, 8388608.0  ;;  %p81_p5 = scmp.ne.s32.totalorder %s34_s12, %s80_s0  ;;  %p86_p7 = scmp.lt.s32.totalorder %s80_s0, %s80_s0 }
  0x11   :  { %vm51_vm1 = vcmp.lt.f32.partialorder %v50_v7, 8388608.0 }
  0x12   :  { %v46_v10 = vand.u32 2147483647, %v45_v5  ;;  %v54_v11 = vand.u32 2147483647, %v53_v8  ;;  %p87_p8 = por %p86_p7, %p85_p6 }
  0x14   :  { %v48_v12 = vor.u32 %v47_v6, %v46_v10  ;;  %v56_v13 = vor.u32 %v55_v9, %v54_v11  ;;  %p88_p9 = pnand %p87_p8, %p81_p5 }
  0x16   :  { %v49_v14 = vsel %vm43_vm0, %v48_v12, %v21_v0  ;;  %v57_v15 = vsel %vm51_vm1, %v56_v13, %v22_v1 }
  0x17   :  { %25 = vst [vmem:[#allocation5] sm:$0xff] %v49_v14  ;;  %26 = vst [vmem:[#allocation5 + $0x8] sm:$0xff] %v57_v15 }
  0x18   :  { %91 = shalt.err (!%p88_p9)
}
  0x19   :  { %36 = dma.vmem_to_hbm [thread:$0]  %s34_s12, 256, %s123_s1, [#allocation4]  }
  0x1a   :  { %102 = dma.done.wait [#allocation4], 256  }
  0x1b   :  { %103 = vsyncadd [#allocation4], 4294967040 }
  0x1c   :  { %40 = vsyncpa [#allocation3], 1 }
  0x1d   :  { %41 = vsyncpa [#allocation4], 1 }

</bundles_post_ra>
